<compile_context>
chip_gen: v5e
topology: v5e:2x2
jax: 0.10.0
libtpu: 0.0.40
codegen_flags: <defaults>
</compile_context>

<pallas_src>
import functools

import numpy as np
import jax
import jax.numpy as jnp
from jax import lax
from jax.experimental import pallas as pl
from jax.experimental.pallas import tpu as pltpu

GAMMA = 2.0
_LANE_CANDIDATES = (512, 256, 128)   # lane-dense widths (multiples of 128)


# ----------------------------------------------------------------------------
# Kernel
# ----------------------------------------------------------------------------
def _focal_kernel(x_ref, t_ref, out_ref, *, gamma, rows_total, steps,
                  binary_targets, has_partial):
    c = pl.program_id(0)          # core-split axis ("parallel")
    i = pl.program_id(1)          # sequential reduction axis ("arbitrary")
    tr, lane = x_ref.shape
    block_id = c * steps + i      # logical row-block index (may be phantom)

    x = x_ref[...].astype(jnp.float32)
    t = t_ref[...].astype(jnp.float32)

    # Stable BCE-with-logits, algebraically identical to
    #   x - x*t + max(-x,0) + log(exp(-max(-x,0)) + exp(-x - max(-x,0)))
    e_x = jnp.exp(-jnp.abs(x))
    loss = jnp.maximum(x, 0.0) - x * t + jnp.log1p(e_x)

    # Focal weight exp(gamma * logsigmoid(z)) == sigmoid(z)**gamma, z = x*(1-2t).
    z = x * (1.0 - 2.0 * t)
    if binary_targets:
        e_z = e_x                         # t in {0,1} => |z| == |x| (exact)
    else:
        e_z = jnp.exp(-jnp.abs(z))

    g = float(gamma)
    if g >= 0.0 and g == int(g):
        # Stable sigmoid + repeated multiply: saves one exp + one log1p per
        # element on the EUP slot.  Exact reciprocal (approx ~1e-4 rel err
        # would be visible at the 1e-5 tolerance used below).
        recip = 1.0 / (1.0 + e_z)
        s = jnp.where(z >= 0.0, recip, e_z * recip)     # sigmoid(z)
        gi = int(g)
        weight = jnp.ones_like(s) if gi == 0 else s
        for _ in range(gi - 1):
            weight = weight * s
    else:
        # General (non-integer) gamma path.
        invprobs = jnp.minimum(z, 0.0) - jnp.log1p(e_z)  # logsigmoid(z)
        weight = jnp.exp(invprobs * g)

    focal = weight * loss

    @pl.when(i == 0)
    def _():
        out_ref[...] = jnp.zeros_like(out_ref)

    def _accumulate(vals):
        if tr % 8 == 0:
            # Per-sublane partials: full-vreg VALU adds, no XLU collapse.
            p = jnp.sum(vals.reshape(tr // 8, 8, lane), axis=0)      # (8, lane)
        else:
            # Tiny-rows fallback (rows < sublane alignment): single block.
            p = jnp.sum(vals, axis=0, keepdims=True)                 # (1, lane)
        out_ref[...] += p[None]

    if not has_partial:
        # Every block is fully valid: no mask work at all.
        _accumulate(focal)
    else:
        # Valid rows in this block (<=0 for phantom blocks of the core split).
        # rows_total ~ numel/128 and tr <= 8192, so this never overflows int32.
        valid_rows = rows_total - block_id * tr

        @pl.when(valid_rows >= tr)        # full block: unmasked fast path
        def _():
            _accumulate(focal)

        @pl.when(valid_rows < tr)         # last partial / phantom block only
        def _():
            row = lax.broadcasted_iota(jnp.int32, (tr, lane), 0)
            _accumulate(jnp.where(row < valid_rows, focal, 0.0))


# ----------------------------------------------------------------------------
# Wrapper helpers
# ----------------------------------------------------------------------------
def _device_config():
    """(ncores, per-input block bytes, vmem_limit_bytes) by TPU generation."""
    kind = ""
    try:
        kind = jax.devices()[0].device_kind.lower()
    except Exception:
        pass
    if "v7" in kind or "tpu7" in kind:
        # 2 TensorCores/chip, 64 MiB VMEM/TC, ~3.2 TB/s HBM: bigger blocks to
        # amortize per-step overhead, split the reduction across both cores.
        return 2, 8 * 1024 * 1024, 40 * 1024 * 1024
    # v5e / v6e (single TensorCore): 4 MiB/input blocks; raise the scoped-VMEM
    # default (16/32 MiB) so 2 inputs x 2 pipeline buffers fit comfortably.
    return 1, 4 * 1024 * 1024, 32 * 1024 * 1024


def _row_align(*dtypes):
    """Row-tile alignment respecting sub-32-bit sublane packing."""
    a = 8
    for d in dtypes:
        it = jnp.dtype(d).itemsize
        if it < 4:
            a = max(a, 8 * (4 // it))    # bf16 -> 16, int8/fp8 -> 32
    return a


def _pick_layout(numel):
    """Largest lane width in {512,256,128} dividing numel (no pad/copy)."""
    for lane in _LANE_CANDIDATES:
        if numel % lane == 0:
            return lane, numel // lane, 0
    lane = _LANE_CANDIDATES[0]
    rows = numel // lane
    return lane, rows, numel - rows * lane     # small ragged tail -> JAX


def _focal_elems(x, t, gamma):
    """Plain-JAX elementwise focal values (sub-128-element tail only)."""
    x = x.astype(jnp.float32)
    t = t.astype(jnp.float32)
    loss = jnp.maximum(x, 0.0) - x * t + jnp.log1p(jnp.exp(-jnp.abs(x)))
    z = x * (1.0 - 2.0 * t)
    invprobs = jnp.minimum(z, 0.0) - jnp.log1p(jnp.exp(-jnp.abs(z)))
    return jnp.exp(invprobs * float(gamma)) * loss


def _focal_sum_pallas(x2, t2, gamma, binary_targets):
    """Sum of focal values over a lane-dense (rows, lane) slab."""
    rows, lane = x2.shape
    ncores_cfg, block_bytes, vmem_limit = _device_config()
    align = _row_align(x2.dtype, t2.dtype)

    if rows < align:
        tr = rows                                         # full-extent block
    else:
        budget_rows = max(align, (block_bytes // (lane * 4) // align) * align)
        tr = min(budget_rows, (rows // align) * align)

    num_blocks = -(-rows // tr)
    ncores = max(1, min(ncores_cfg, num_blocks))
    steps = -(-num_blocks // ncores)
    has_partial = (rows % tr != 0) or (ncores * steps != num_blocks)
    out_sub = 8 if tr % 8 == 0 else 1

    kernel = functools.partial(
        _focal_kernel, gamma=float(gamma), rows_total=rows, steps=steps,
        binary_targets=bool(binary_targets), has_partial=bool(has_partial))

    last_block = num_blocks - 1

    def in_map(c, i):
        # Phantom blocks of the core split are clamped to a valid block; the
        # in-kernel mask zeroes their contribution.
        return (jnp.minimum(c * steps + i, last_block), 0)

    partials = pl.pallas_call(
        kernel,
        out_shape=jax.ShapeDtypeStruct((ncores, out_sub, lane), jnp.float32),
        grid_spec=pltpu.PrefetchScalarGridSpec(
            num_scalar_prefetch=0,
            grid=(ncores, steps),
            in_specs=[pl.BlockSpec((tr, lane), in_map),
                      pl.BlockSpec((tr, lane), in_map)],
            out_specs=pl.BlockSpec((1, out_sub, lane), lambda c, i: (c, 0, 0)),
        ),
        compiler_params=pltpu.CompilerParams(
            dimension_semantics=("parallel", "arbitrary"),
            vmem_limit_bytes=vmem_limit,
        ),
    )(x2, t2)

    # Tiny finalization: cross-lane / cross-sublane / cross-core sum.
    return jnp.sum(partials)


# ----------------------------------------------------------------------------
# Public entry point
# ----------------------------------------------------------------------------
def focal_loss(x, target, gamma=GAMMA, binary_targets=False):
    """Binary focal loss with logits (PyTorch FocalLoss.forward).

    `x` and `target` must have the same shape, at least 2-D (N, C, ...).
    Input dtypes are passed through unchanged (pass bf16 logits/targets to
    halve HBM traffic; math and accumulation are f32 inside the kernel).
    Set `binary_targets=True` when `target` is guaranteed to be {0,1} — this
    shares exp(-|x|) between the BCE and focal-weight terms (exact for binary
    targets, invalid for soft targets).
    """
    if x.shape != target.shape:
        raise ValueError('Target size ({}) must be the same as input size ({})'
                         .format(target.shape, x.shape))

    n_class = x.shape[1]
    numel = int(np.prod(x.shape))
    divisor = numel // n_class          # = numel / C  (mean of sum(dim=1))

    flat_x = x.reshape(-1)              # metadata-only reshape, no copy
    flat_t = target.reshape(-1)

    lane, rows, tail = _pick_layout(numel)
    main_elems = rows * lane

    total = jnp.float32(0.0)
    if rows > 0:
        if tail == 0:
            x2 = flat_x.reshape(rows, lane)          # free reshape, no copy
            t2 = flat_t.reshape(rows, lane)
        else:
            # TODO(synk): numel not a multiple of 128 still copies the aligned
            # prefix once; a manual-DMA (pl.ANY) path would avoid the copy.
            x2 = lax.slice(flat_x, (0,), (main_elems,)).reshape(rows, lane)
            t2 = lax.slice(flat_t, (0,), (main_elems,)).reshape(rows, lane)
        total = total + _focal_sum_pallas(x2, t2, gamma, binary_targets)

    if tail > 0:
        tx = lax.slice(flat_x, (main_elems,), (numel,))
        tt = lax.slice(flat_t, (main_elems,), (numel,))
        total = total + jnp.sum(_focal_elems(tx, tt, gamma))

    return total / jnp.float32(divisor)


# ----------------------------------------------------------------------------
# Reference + self-test
# ----------------------------------------------------------------------------
def _focal_loss_ref(x, t, gamma=GAMMA):
    """Pure-JAX mirror of the PyTorch reference (max_val formulation)."""
    x = x.astype(jnp.float32)
    t = t.astype(jnp.float32)
    max_val = jnp.maximum(-x, 0.0)
    loss = x - x * t + max_val + jnp.log(jnp.exp(-max_val) + jnp.exp(-x - max_val))
    z = -x * (t * 2.0 - 1.0)
    invprobs = jnp.minimum(z, 0.0) - jnp.log1p(jnp.exp(-jnp.abs(z)))
    loss = jnp.exp(invprobs * gamma) * loss
    return loss.sum(axis=1).mean()


if __name__ == "__main__":
    key = jax.random.PRNGKey(0)
    k1, k2 = jax.random.split(key)
    # NCHW logits and {0,1} targets, small shapes.
    x = jax.random.normal(k1, (2, 4, 16, 16), dtype=jnp.float32)
    target = (jax.random.uniform(k2, (2, 4, 16, 16)) > 0.5).astype(jnp.float32)

    out = focal_loss(x, target)
    out = jax.block_until_ready(out)

    ref = _focal_loss_ref(x, target)
    np.testing.assert_allclose(np.asarray(out), np.asarray(ref),
                               rtol=1e-5, atol=1e-5)

    print("KERNEL_OK")
</pallas_src>

<mosaic_0001>
module attributes {stable_mosaic.version = 11 : i64} {
  func.func @_focal_kernel(%arg0: i32, %arg1: i32, %arg2: memref<4x512xf32, #tpu.memory_space<vmem>>, %arg3: memref<4x512xf32, #tpu.memory_space<vmem>>, %arg4: memref<1x1x512xf32, #tpu.memory_space<vmem>>) attributes {dimension_semantics = [#tpu.dimension_semantics<parallel>, #tpu.dimension_semantics<arbitrary>], iteration_bounds = array<i64: 1, 1>, scalar_prefetch = 0 : i64, scratch_operands = 0 : i64, tpu.core_type = #tpu.core_type<tc>, window_params = [{transform_indices = @transform_0, window_bounds = array<i64: 4, 512>}, {transform_indices = @transform_1, window_bounds = array<i64: 4, 512>}, {transform_indices = @transform_2, window_bounds = array<i64: 1, 1, 512>}]} {
    %c0 = arith.constant 0 : index
    %c0_0 = arith.constant 0 : index
    %0 = vector.load %arg2[%c0, %c0_0] : memref<4x512xf32, #tpu.memory_space<vmem>>, vector<4x512xf32>
    %c0_1 = arith.constant 0 : index
    %c0_2 = arith.constant 0 : index
    %1 = vector.load %arg3[%c0_1, %c0_2] : memref<4x512xf32, #tpu.memory_space<vmem>>, vector<4x512xf32>
    %2 = math.absf %0 : vector<4x512xf32>
    %cst = arith.constant 0.000000e+00 : f32
    %3 = vector.broadcast %cst : f32 to vector<4x512xf32>
    %4 = arith.subf %3, %2 : vector<4x512xf32>
    %5 = math.exp %4 : vector<4x512xf32>
    %cst_3 = arith.constant 0.000000e+00 : f32
    %6 = vector.broadcast %cst_3 : f32 to vector<4x512xf32>
    %7 = arith.maximumf %0, %6 : vector<4x512xf32>
    %8 = arith.mulf %0, %1 : vector<4x512xf32>
    %9 = arith.subf %7, %8 : vector<4x512xf32>
    %10 = math.log1p %5 : vector<4x512xf32>
    %11 = arith.addf %9, %10 : vector<4x512xf32>
    %cst_4 = arith.constant 2.000000e+00 : f32
    %12 = vector.broadcast %cst_4 : f32 to vector<4x512xf32>
    %13 = arith.mulf %12, %1 : vector<4x512xf32>
    %cst_5 = arith.constant 1.000000e+00 : f32
    %14 = vector.broadcast %cst_5 : f32 to vector<4x512xf32>
    %15 = arith.subf %14, %13 : vector<4x512xf32>
    %16 = arith.mulf %0, %15 : vector<4x512xf32>
    %17 = math.absf %16 : vector<4x512xf32>
    %cst_6 = arith.constant 0.000000e+00 : f32
    %18 = vector.broadcast %cst_6 : f32 to vector<4x512xf32>
    %19 = arith.subf %18, %17 : vector<4x512xf32>
    %20 = math.exp %19 : vector<4x512xf32>
    %cst_7 = arith.constant 1.000000e+00 : f32
    %21 = vector.broadcast %cst_7 : f32 to vector<4x512xf32>
    %22 = arith.addf %21, %20 : vector<4x512xf32>
    %cst_8 = arith.constant 1.000000e+00 : f32
    %23 = vector.broadcast %cst_8 : f32 to vector<4x512xf32>
    %24 = arith.divf %23, %22 : vector<4x512xf32>
    %cst_9 = arith.constant 0.000000e+00 : f32
    %25 = vector.broadcast %cst_9 : f32 to vector<4x512xf32>
    %26 = arith.cmpf oge, %16, %25 : vector<4x512xf32>
    %27 = arith.mulf %20, %24 : vector<4x512xf32>
    %28 = arith.select %26, %24, %27 : vector<4x512xi1>, vector<4x512xf32>
    %29 = arith.mulf %28, %28 : vector<4x512xf32>
    %30 = arith.mulf %29, %11 : vector<4x512xf32>
    %c0_i32 = arith.constant 0 : i32
    %31 = arith.cmpi eq, %arg1, %c0_i32 : i32
    %32 = arith.extui %31 : i1 to i32
    %c0_i32_10 = arith.constant 0 : i32
    %33 = arith.cmpi ne, %32, %c0_i32_10 : i32
    scf.if %33 {
      %cst_18 = arith.constant 0.000000e+00 : f32
      %40 = vector.broadcast %cst_18 : f32 to vector<1x1x512xf32>
      %c0_19 = arith.constant 0 : index
      %c0_20 = arith.constant 0 : index
      %c0_21 = arith.constant 0 : index
      %41 = vector.load %arg4[%c0_19, %c0_20, %c0_21] : memref<1x1x512xf32, #tpu.memory_space<vmem>>, vector<1x1x512xf32>
      tpu.vector_store %arg4[%c0_19, %c0_20, %c0_21], %40 {strides = array<i32>} : memref<1x1x512xf32, #tpu.memory_space<vmem>>, vector<1x1x512xf32>,
    } else {
    }
    %cst_11 = arith.constant dense<0.000000e+00> : vector<512xf32>
    %34 = vector.multi_reduction <add>, %30, %cst_11 [0] : vector<4x512xf32> to vector<512xf32>
    %35 = vector.shape_cast %34 : vector<512xf32> to vector<1x512xf32>
    %c0_12 = arith.constant 0 : index
    %c0_13 = arith.constant 0 : index
    %c0_14 = arith.constant 0 : index
    %36 = vector.load %arg4[%c0_12, %c0_13, %c0_14] : memref<1x1x512xf32, #tpu.memory_space<vmem>>, vector<1x1x512xf32>
    %37 = vector.shape_cast %35 : vector<1x512xf32> to vector<1x1x512xf32>
    %38 = arith.addf %36, %37 : vector<1x1x512xf32>
    %c0_15 = arith.constant 0 : index
    %c0_16 = arith.constant 0 : index
    %c0_17 = arith.constant 0 : index
    %39 = vector.load %arg4[%c0_15, %c0_16, %c0_17] : memref<1x1x512xf32, #tpu.memory_space<vmem>>, vector<1x1x512xf32>
    tpu.vector_store %arg4[%c0_15, %c0_16, %c0_17], %38 {strides = array<i32>} : memref<1x1x512xf32, #tpu.memory_space<vmem>>, vector<1x1x512xf32>,
    return
  }
  func.func @transform_0(%arg0: i32, %arg1: i32) -> (i32, i32) {
    %c1_i32 = arith.constant 1 : i32
    %0 = arith.muli %arg0, %c1_i32 : i32
    %1 = arith.addi %0, %arg1 : i32
    %c0_i32 = arith.constant 0 : i32
    %2 = arith.minsi %1, %c0_i32 : i32
    %c0_i32_0 = arith.constant 0 : i32
    %c0_i32_1 = arith.constant 0 : i32
    return %2, %c0_i32_0 : i32, i32
  }
  func.func @transform_1(%arg0: i32, %arg1: i32) -> (i32, i32) {
    %c1_i32 = arith.constant 1 : i32
    %0 = arith.muli %arg0, %c1_i32 : i32
    %1 = arith.addi %0, %arg1 : i32
    %c0_i32 = arith.constant 0 : i32
    %2 = arith.minsi %1, %c0_i32 : i32
    %c0_i32_0 = arith.constant 0 : i32
    %c0_i32_1 = arith.constant 0 : i32
    return %2, %c0_i32_0 : i32, i32
  }
  func.func @transform_2(%arg0: i32, %arg1: i32) -> (i32, i32, i32) {
    %c0_i32 = arith.constant 0 : i32
    %c0_i32_0 = arith.constant 0 : i32
    %c0_i32_1 = arith.constant 0 : i32
    return %arg0, %c0_i32, %c0_i32_0 : i32, i32, i32
  }
}

</mosaic_0001>

<bundles_post_ra>
// kernel: tpu_custom_call.1
= control target key start
LH: loop header
LB: loop body
LE: loop exit
PB: predicated region body
PF: predicated region fallthrough
CT: control target
= control target key end

     0   :  { %7 = vsyncpa [#allocation3], 0  ;;  %s424_s0 = inlined_call_operand.hbm [shape: f32[4,512], index: 0, kind: input, shape index: {}]   ;;  %s425_s1 = inlined_call_operand.hbm [shape: f32[4,512], index: 1, kind: input, shape index: {}]   ;;  %s426_s2 = inlined_call_operand.hbm [shape: f32[1,1,512], index: 2, kind: output, shape index: {}]  }
   0x1   :  { %8 = vsyncpa [#allocation6], 0 }
   0x2   :  { %9 = vsyncpa [#allocation4], 0  ;;  %s21_s11 = sshll.u32 %s424_s0, 4  ;;  %s344_s12 = smov [#allocation2]   ;;  %s22_s11 = int_to_ptr.hbm [resolvable:$true] %s21_s11 }
   0x3   :  { %s23_s13 = sshll.u32 %s344_s12, 4  ;;  %s38_s16 = sshll.u32 %s425_s1, 4  ;;  %s24_s13 = int_to_ptr.vmem [resolvable:$true] %s23_s13  ;;  %s39_s16 = int_to_ptr.hbm [resolvable:$true] %s38_s16 }
   0x4   :  { %26 = dma.hbm_to_vmem [thread:$0]  %s22_s11, 256, %s24_s13, [#allocation3]  }
   0x5   :  { %s345_s17 = smov [#allocation5]  }
   0x6   :  { %s40_s18 = sshll.u32 %s345_s17, 4  ;;  %s41_s18 = int_to_ptr.vmem [resolvable:$true] %s40_s18 }
   0x7   :  { %43 = dma.hbm_to_vmem [thread:$0]  %s39_s16, 256, %s41_s18, [#allocation6]  }
   0x8   :  { %338 = dma.done.wait [#allocation3], 256  }
   0x9   :  { %339 = vsyncadd [#allocation3], 4294967040 }
   0xa   :  { %340 = dma.done.wait [#allocation6], 256  }
   0xb   :  { %341 = vsyncadd [#allocation6], 4294967040  ;;  %v369_v0 = vld [vmem:[#allocation2] sm:$0xff]  ;;  %v60_v1 = vld [vmem:[#allocation5] sm:$0xff]  ;;  %v156_v22 = vlaneseq  ;;  %v346_v26 = vmov 0.0   ;;  %vm174_vm13 = vcmask 1043456  }
   0xc   :  { %v62_v2 = vand.u32 2147483647, %v369_v0  ;;  %v96_v3 = vmul.f32 2.0, %v60_v1  ;;  %v372_v4 = vld [vmem:[#allocation2 + $0x8] sm:$0xff]  ;;  %v61_v5 = vld [vmem:[#allocation5 + $0x8] sm:$0xff]  ;;  %v70_v36 = vmax.f32 %v369_v0, 0.0  ;;  %v72_v37 = vmul.f32 %v60_v1, %v369_v0 }
   0xd   :  { %v63_v6 = vand.u32 2147483647, %v372_v4  ;;  %v97_v7 = vmul.f32 2.0, %v61_v5  ;;  %vm383_vm0 = vcmp.lt.s32.totalorder %v156_v22, 512  ;;  %v71_v38 = vmax.f32 %v372_v4, 0.0  ;;  %s347_s0 = smov [#allocation7]  }
   0xe   :  { %v64_v8 = vsub.f32 0.0, %v62_v2  ;;  %v98_v9 = vsub.f32 1.0, %v96_v3  ;;  %160 = vst.msk [vmem:[#allocation7] sm:$0xf] %vm383_vm0, %v346_v26  ;;  %v73_v39 = vmul.f32 %v61_v5, %v372_v4  ;;  %v74_v3 = vsub.f32 %v70_v36, %v72_v37  ;;  %s229_s1 = sshll.u32 %s347_s0, 4  ;;  %s231_s21 = sshll.u32 %s426_s2, 4  ;;  %s230_s1 = int_to_ptr.vmem [resolvable:$true] %s229_s1  ;;  %s232_s21 = int_to_ptr.hbm [resolvable:$true] %s231_s21 }
   0xf   :  { %v65_v10 = vsub.f32 0.0, %v63_v6  ;;  %v99_v11 = vsub.f32 1.0, %v97_v7  ;;  %vm211_vm14 = vcmask 1040384   ;;  %vm213_vm15 = vcmask 1042434  }
  0x10   :  { %v376_v12 = vmul.f32 %v98_v9, %v369_v0  ;;  %v66_v14 = vmul.f32 1.442695, %v64_v8  ;;  %v75_v7 = vsub.f32 %v71_v38, %v73_v39 }
  0x11   :  { %v379_v13 = vmul.f32 %v99_v11, %v372_v4  ;;  %v68_v16 = vmul.f32 1.442695, %v65_v10 }
  0x12   :  { %v102_v15 = vand.u32 2147483647, %v376_v12  ;;  %250 = vpow2.f32 %v66_v14  ;;  %vm142_vm11 = vcmp.ge.f32.partialorder %v376_v12, 0.0 }
  0x13   :  { %v103_v17 = vand.u32 2147483647, %v379_v13  ;;  %252 = vpow2.f32 %v68_v16  ;;  %vm143_vm12 = vcmp.ge.f32.partialorder %v379_v13, 0.0 }
  0x14   :  { %v104_v18 = vsub.f32 0.0, %v102_v15 }
  0x15   :  { %v105_v19 = vsub.f32 0.0, %v103_v17 }
  0x16   :  { %v106_v20 = vmul.f32 1.442695, %v104_v18 }
  0x17   :  { %v108_v21 = vmul.f32 1.442695, %v105_v19 }
  0x18   :  { %254 = vpow2.f32 %v106_v20  ;;  %v251_v23 = vpop.eup %250 }
  0x19   :  { %256 = vpow2.f32 %v108_v21  ;;  %v253_v25 = vpop.eup %252  ;;  %v76_v29 = vadd.f32 1.0, %v251_v23  ;;  %v79_v33 = vmul.f32 -0.5, %v251_v23  ;;  %v82_v42 = vand.u32 2147483647, %v251_v23 }
  0x1a   :  { %v85_v31 = vadd.f32 1.0, %v253_v25  ;;  %v88_v34 = vmul.f32 -0.5, %v253_v25  ;;  %v91_v44 = vand.u32 2147483647, %v253_v25 }
  0x1b   :  { %v80_v41 = vadd.f32 1.0, %v79_v33  ;;  %vm396_vm5 = vcmp.lt.f32.partialorder %v82_v42, 0.0004427343 }
  0x1c   :  { %v89_v47 = vadd.f32 1.0, %v88_v34  ;;  %vm405_vm8 = vcmp.lt.f32.partialorder %v91_v44, 0.0004427343 }
  0x1d   :  { %v81_v56 = vmul.f32 %v251_v23, %v80_v41 }
  0x1e   :  { %v255_v27 = vpop.eup %254  ;;  %v90_v62 = vmul.f32 %v253_v25, %v89_v47 }
  0x1f   :  { %v389_v28 = vpop.eup %256  ;;  %v110_v30 = vadd.f32 1.0, %v255_v27 }
  0x20   :  { %v111_v32 = vadd.f32 1.0, %v389_v28 }
  0x21   :  { %258 = vrcp.f32 %v110_v30  ;;  %vm117_vm1 = vweird.f32 %v110_v30  ;;  %v123_v46 = vand.u32 2147483648, %v110_v30  ;;  %v121_v51 = vand.u32 2147483647, %v110_v30 }
  0x22   :  { %260 = vrcp.f32 %v111_v32  ;;  %v138_v52 = vand.u32 2147483648, %v111_v32  ;;  %vm132_vm3 = vweird.f32 %v111_v32  ;;  %v136_v54 = vand.u32 2147483647, %v111_v32 }
  0x23   :  { %262 = vlog2.f32 %v76_v29  ;;  %v124_v60 = vor.u32 1.1754944e-38, %v123_v46  ;;  %vm122_vm7 = vcmp.eq.f32.partialorder %v121_v51, 8.507059e+37 }
  0x24   :  { %264 = vlog2.f32 %v85_v31  ;;  %v139_v2 = vor.u32 1.1754944e-38, %v138_v52  ;;  %vm137_vm10 = vcmp.eq.f32.partialorder %v136_v54, 8.507059e+37 }
  0x27   :  { %v259_v35 = vpop.eup %258 }
  0x28   :  { %v261_v40 = vpop.eup %260  ;;  %v113_v43 = vmul.f32 %v259_v35, %v110_v30  ;;  %vm118_vm2 = vweird.f32 %v259_v35 }
  0x29   :  { %v263_v45 = vpop.eup %262  ;;  %v128_v48 = vmul.f32 %v261_v40, %v111_v32  ;;  %vm133_vm4 = vweird.f32 %v261_v40  ;;  %vm401_vm6 = vmor %vm117_vm1, %vm118_vm2  ;;  %vm215_vm1 = vcmask 1041408  }
  0x2a   :  { %v265_v49 = vpop.eup %264  ;;  %v114_v50 = vsub.f32 1.0, %v113_v43  ;;  %v78_v55 = vmul.f32 0.6931472, %v263_v45  ;;  %vm134_vm9 = vmor %vm132_vm3, %vm133_vm4 }
  0x2b   :  { %v129_v53 = vsub.f32 1.0, %v128_v48  ;;  %v87_v61 = vmul.f32 0.6931472, %v265_v49 }
  0x2c   :  { %v115_v58 = vmul.f32 %v259_v35, %v114_v50  ;;  %v84_v5 = vsel %vm396_vm5, %v81_v56, %v78_v55 }
  0x2d   :  { %v130_v63 = vmul.f32 %v261_v40, %v129_v53  ;;  %v93_v9 = vsel %vm405_vm8, %v90_v62, %v87_v61  ;;  %v94_v15 = vadd.f32 %v84_v5, %v74_v3 }
  0x2e   :  { %v116_v0 = vadd.f32 %v259_v35, %v115_v58  ;;  %v95_v18 = vadd.f32 %v93_v9, %v75_v7  ;;  %v203_v58 = vld [vmem:[#allocation7] sm:$0xf] }
  0x2f   :  { %v131_v4 = vadd.f32 %v261_v40, %v130_v63 }
  0x30   :  { %v120_v6 = vsel %vm401_vm6, %v259_v35, %v116_v0 }
  0x31   :  { %v125_v8 = vsel %vm122_vm7, %v124_v60, %v120_v6  ;;  %v135_v10 = vsel %vm134_vm9, %v261_v40, %v131_v4 }
  0x32   :  { %v144_v11 = vmul.f32 %v255_v27, %v125_v8  ;;  %v140_v14 = vsel %vm137_vm10, %v139_v2, %v135_v10 }
  0x33   :  { %v145_v16 = vmul.f32 %v389_v28, %v140_v14 }
  0x34   :  { %v146_v17 = vsel %vm142_vm11, %v125_v8, %v144_v11 }
  0x35   :  { %v148_v19 = vmul.f32 %v146_v17, %v146_v17  ;;  %v147_v20 = vsel %vm143_vm12, %v140_v14, %v145_v16 }
  0x36   :  { %v149_v21 = vmul.f32 %v147_v20, %v147_v20 }
  0x37   :  { %v150_v22 = vmul.f32 %v148_v19, %v94_v15 }
  0x38   :  { %v151_v23 = vmul.f32 %v149_v21, %v95_v18 }
  0x39   :  { %163 = vst [vmem:[#allocation1] ss:$2 sm:$0xff] %v150_v22 }
  0x3a   :  { %165 = vst [vmem:[#allocation1 + $0x10] ss:$2 sm:$0xff] %v151_v23 }
  0x40   :  { %v166_v12 = vld.sshfl [vmem:[#allocation1] sm:$0xff pattern:$0x75316420]  ;;  %v167_v25 = vld.sshfl [vmem:[#allocation1 + $0x8] sm:$0xff pattern:$0x75316420] }
  0x41   :  { %v168_v26 = vld.sshfl [vmem:[#allocation1 + $0x10] sm:$0xff pattern:$0x75316420]  ;;  %v169_v27 = vld.sshfl [vmem:[#allocation1 + $0x18] sm:$0xff pattern:$0x75316420] }
  0x42   :  { %v175_v29 = vsel %vm174_vm13, %v166_v12, 0.0  ;;  %v182_v30 = vsel %vm174_vm13, %v167_v25, 0.0  ;;  %v189_v13 = vsel %vm174_vm13, %v168_v26, 0.0  ;;  %v196_v31 = vsel %vm174_vm13, %v169_v27, 0.0 }
  0x43   :  { %v176_v32 = vrot.slane %v175_v29, 4  ;;  %v183_v28 = vrot.slane %v182_v30, 4  ;;  %v190_v33 = vrot.slane %v189_v13, 4  ;;  %v197_v34 = vrot.slane %v196_v31, 4 }
  0x45   :  { %v177_v35 = vadd.f32 %v176_v32, %v175_v29  ;;  %v184_v36 = vadd.f32 %v183_v28, %v182_v30  ;;  %v191_v37 = vadd.f32 %v190_v33, %v189_v13  ;;  %v198_v38 = vadd.f32 %v197_v34, %v196_v31 }
  0x47   :  { %v178_v39 = vrot.slane %v177_v35, 2  ;;  %v185_v40 = vrot.slane %v184_v36, 2  ;;  %v192_v41 = vrot.slane %v191_v37, 2  ;;  %v199_v42 = vrot.slane %v198_v38, 2 }
  0x49   :  { %v179_v43 = vadd.f32 %v178_v39, %v177_v35  ;;  %v186_v44 = vadd.f32 %v185_v40, %v184_v36  ;;  %v193_v45 = vadd.f32 %v192_v41, %v191_v37  ;;  %v200_v46 = vadd.f32 %v199_v42, %v198_v38 }
  0x4b   :  { %v180_v47 = vrot.slane %v179_v43, 1  ;;  %v187_v48 = vrot.slane %v186_v44, 1  ;;  %v194_v49 = vrot.slane %v193_v45, 1  ;;  %v201_v50 = vrot.slane %v200_v46, 1 }
  0x4d   :  { %v188_v51 = vadd.f32 %v187_v48, %v186_v44  ;;  %v195_v52 = vadd.f32 %v194_v49, %v193_v45  ;;  %v202_v53 = vadd.f32 %v201_v50, %v200_v46  ;;  %v181_v54 = vadd.f32 %v180_v47, %v179_v43 }
  0x4f   :  { %v208_v55 = vrot.slane %v188_v51, 7  ;;  %v209_v56 = vrot.slane %v195_v52, 6  ;;  %v210_v57 = vrot.slane %v202_v53, 5 }
  0x51   :  { %v212_v59 = vsel %vm211_vm14, %v181_v54, %v208_v55  ;;  %v214_v60 = vsel %vm213_vm15, %v209_v56, %v210_v57 }
  0x52   :  { %v216_v61 = vsel %vm215_vm1, %v212_v59, %v214_v60 }
  0x53   :  { %v218_v62 = vadd.f32 %v216_v61, %v203_v58 }
  0x55   :  { %223 = vst.msk [vmem:[#allocation7] sm:$0xf] %vm383_vm0, %v218_v62 }
  0x56   :  { %234 = dma.vmem_to_hbm [thread:$0]  %s230_s1, 64, %s232_s21, [#allocation4]  }
  0x57   :  { %342 = dma.done.wait [#allocation4], 64  }
  0x58   :  { %343 = vsyncadd [#allocation4], 4294967232 }
  0x59   :  { %239 = vsyncpa [#allocation3], 1 }
  0x5a   :  { %240 = vsyncpa [#allocation6], 1 }
  0x5b   :  { %241 = vsyncpa [#allocation4], 1 }

</bundles_post_ra>
